<compile_context>
chip_gen: v6e
topology: v6e:2x2x1
jax: 0.10.0
libtpu: 0.0.40
codegen_flags: <defaults>
</compile_context>

<pallas_src>
import functools

import jax
import jax.numpy as jnp
from jax.experimental import pallas as pl
from jax.experimental.pallas import tpu as pltpu

# Pooling hyper-params (module defaults).
KH, KW = 3, 3
SH, SW = 1, 1
PH, PW = 1, 1


def _limit(dtype, lowest):
    if jnp.issubdtype(dtype, jnp.floating):
        val = -jnp.inf if lowest else jnp.inf
    else:
        ii = jnp.iinfo(dtype)
        val = ii.min if lowest else ii.max
    return jnp.asarray(val, dtype=dtype)


def _maxpool_kernel(x_ref, o_ref, *, H, W):
    # x_ref / o_ref block: (tnc, H*W) -- each row is one flattened (H, W) plane.
    # Rolls are along the lane axis only, so rows (planes) never mix.
    HW = H * W
    x = x_ref[...]
    neg = _limit(x.dtype, lowest=True)
    pos = _limit(x.dtype, lowest=False)

    # Per-direction caps, built once per invocation at (1, HW): +inf/int-max in
    # the interior, -inf/int-min where the rolled neighbor would wrap across a
    # row or plane edge.  jnp.minimum broadcasts them across sublanes, so the
    # per-output-vreg VALU work is only 4 min + 4 max (no block-shaped
    # iota/rem/compares).
    lane = jax.lax.broadcasted_iota(jnp.int32, (1, HW), 1)        # h*W + w
    if (W & (W - 1)) == 0:                                        # static branch
        col = jnp.bitwise_and(lane, W - 1)                        # w (pow-2 W)
    else:
        col = jax.lax.rem(lane, W)                                # w (general W)
    cap_left = jnp.where(col == 0, neg, pos)        # (h, w-1) invalid at w == 0
    cap_right = jnp.where(col == W - 1, neg, pos)   # (h, w+1) invalid at w == W-1
    cap_up = jnp.where(lane < W, neg, pos)          # (h-1, w) invalid at h == 0
    cap_down = jnp.where(lane >= HW - W, neg, pos)  # (h+1, w) invalid at h == H-1

    # Pass 1: horizontal 3-max (neighbors at +-1 in the flattened row).
    hmax = jnp.maximum(
        jnp.maximum(jnp.minimum(pltpu.roll(x, 1, axis=1), cap_left), x),
        jnp.minimum(pltpu.roll(x, HW - 1, axis=1), cap_right))

    # Pass 2: vertical 3-max of the horizontal result (neighbors at +-W).
    o_ref[...] = jnp.maximum(
        jnp.maximum(jnp.minimum(pltpu.roll(hmax, W, axis=1), cap_up), hmax),
        jnp.minimum(pltpu.roll(hmax, HW - W, axis=1), cap_down))


def _vmem_capacity_bytes():
    try:
        return int(pltpu.get_tpu_info().vmem_capacity_bytes)
    except Exception:
        return 64 * 1024 * 1024   # conservative fallback (v7x per-core VMEM)


def _round_up(a, b):
    return ((a + b - 1) // b) * b


def maxpool2d(x):
    """x: (N, C, H, W) -> (N, C, H, W), matching torch.nn.MaxPool2d(3, 1, 1)."""
    N, C, H, W = x.shape
    assert SH == 1 and SW == 1  # TODO(synk): strides > 1 would need a strided output gather.
    NC, HW = N * C, H * W
    itemsize = x.dtype.itemsize
    plane_bytes = HW * itemsize

    # Free (view-only) reshape of contiguous NCHW -> (N*C, H*W) lane-dense rows.
    xf = x.reshape(NC, HW)

    # ---- generation-aware block sizing --------------------------------------
    vmem_cap = _vmem_capacity_bytes()             # 64 MiB v7x, 128 MiB v5e/v6e
    # >=1 MiB blocks already sit near the HBM roofline; keep them modest on v7x
    # (2 MiB) and larger on v5e/v6e (4 MiB).
    in_block_budget = max(1 << 20, min(4 << 20, vmem_cap // 32))

    sub = max(8, 32 // itemsize)                  # sublane multiple: 8 f32 / 16 bf16 / 32 i8
    max_tnc = in_block_budget // plane_bytes
    if NC <= max_tnc:
        tnc = NC                                  # full leading dim -> always a legal block
    else:
        tnc = (max_tnc // sub) * sub
        if tnc < sub:
            # TODO(synk): planes larger than the block budget need H-tiling with a
            # 1-row halo; refuse instead of silently blowing past VMEM.
            raise NotImplementedError(
                f"({H}x{W}) plane = {plane_bytes} B exceeds the per-block VMEM "
                f"budget ({in_block_budget} B); H-tiling not implemented")

    # Keep >= 4 grid steps when the problem is big enough so v7x's two
    # TensorCores both get work (no effect on single-TC v5e/v6e).
    TARGET_STEPS = 4
    if NC >= TARGET_STEPS * sub:
        tnc = min(tnc, _round_up(pl.cdiv(NC, TARGET_STEPS), sub))

    grid = (pl.cdiv(NC, tnc),)

    # Scoped-VMEM limit from the real footprint: double-buffered in + out blocks
    # plus a handful of block-sized temporaries inside the body.
    block_bytes = tnc * HW * itemsize
    vmem_limit = int(max(16 << 20, min(vmem_cap * 3 // 4, 10 * block_bytes + (2 << 20))))

    total_bytes = NC * HW * itemsize
    cost = pl.CostEstimate(
        flops=8 * NC * HW,                 # 4 min + 4 max per output element
        transcendentals=0,
        bytes_accessed=2 * total_bytes,    # exactly one read + one write per element
    )

    kernel = functools.partial(_maxpool_kernel, H=H, W=W)
    out = pl.pallas_call(
        kernel,
        out_shape=jax.ShapeDtypeStruct((NC, HW), x.dtype),
        grid=grid,
        in_specs=[pl.BlockSpec((tnc, HW), lambda i: (i, 0))],
        out_specs=pl.BlockSpec((tnc, HW), lambda i: (i, 0)),
        compiler_params=pltpu.CompilerParams(
            dimension_semantics=("parallel",),    # lets v7x shard plane-chunks across its 2 TCs
            vmem_limit_bytes=vmem_limit,
        ),
        cost_estimate=cost,
    )(xf)
    return out.reshape(N, C, H, W)


if __name__ == "__main__":
    key = jax.random.PRNGKey(0)
    x = jax.random.normal(key, (2, 4, 16, 16), dtype=jnp.float32)

    y = jax.block_until_ready(maxpool2d(x))

    # Reference: XLA reduce_window with the same (3,3)/s1/p1 max-pool semantics.
    ref = jax.lax.reduce_window(
        x, -jnp.inf, jax.lax.max,
        window_dimensions=(1, 1, KH, KW),
        window_strides=(1, 1, SH, SW),
        padding=((0, 0), (0, 0), (PH, PH), (PW, PW)),
    )
    assert y.shape == (2, 4, 16, 16)
    assert jnp.allclose(y, ref), "mismatch vs reference max pool"

    print("KERNEL_OK")
</pallas_src>

<mosaic_0001>
module attributes {stable_mosaic.version = 11 : i64} {
  func.func @_maxpool_kernel(%arg0: i32, %arg1: memref<8x256xf32, #tpu.memory_space<vmem>>, %arg2: memref<8x256xf32, #tpu.memory_space<vmem>>) attributes {dimension_semantics = [#tpu.dimension_semantics<parallel>], iteration_bounds = array<i64: 1>, scalar_prefetch = 0 : i64, scratch_operands = 0 : i64, tpu.core_type = #tpu.core_type<tc>, window_params = [{transform_indices = @transform_0, window_bounds = array<i64: 8, 256>}, {transform_indices = @transform_1, window_bounds = array<i64: 8, 256>}]} {
    %c0 = arith.constant 0 : index
    %c0_0 = arith.constant 0 : index
    %0 = vector.load %arg1[%c0, %c0_0] : memref<8x256xf32, #tpu.memory_space<vmem>>, vector<8x256xf32>
    %1 = tpu.iota {dimensions = array<i32: 1>} : vector<1x256xi32>
    %c15_i32 = arith.constant 15 : i32
    %2 = vector.broadcast %c15_i32 : i32 to vector<1x256xi32>
    %3 = arith.andi %1, %2 : vector<1x256xi32>
    %c0_i32 = arith.constant 0 : i32
    %4 = vector.broadcast %c0_i32 : i32 to vector<1x256xi32>
    %5 = arith.cmpi eq, %3, %4 : vector<1x256xi32>
    %cst = arith.constant 0xFF800000 : f32
    %cst_1 = arith.constant 0x7F800000 : f32
    %6 = vector.broadcast %cst : f32 to vector<1x256xf32>
    %7 = vector.broadcast %cst_1 : f32 to vector<1x256xf32>
    %8 = arith.select %5, %6, %7 : vector<1x256xi1>, vector<1x256xf32>
    %c15_i32_2 = arith.constant 15 : i32
    %9 = vector.broadcast %c15_i32_2 : i32 to vector<1x256xi32>
    %10 = arith.cmpi eq, %3, %9 : vector<1x256xi32>
    %cst_3 = arith.constant 0xFF800000 : f32
    %cst_4 = arith.constant 0x7F800000 : f32
    %11 = vector.broadcast %cst_3 : f32 to vector<1x256xf32>
    %12 = vector.broadcast %cst_4 : f32 to vector<1x256xf32>
    %13 = arith.select %10, %11, %12 : vector<1x256xi1>, vector<1x256xf32>
    %c16_i32 = arith.constant 16 : i32
    %14 = vector.broadcast %c16_i32 : i32 to vector<1x256xi32>
    %15 = arith.cmpi slt, %1, %14 : vector<1x256xi32>
    %cst_5 = arith.constant 0xFF800000 : f32
    %cst_6 = arith.constant 0x7F800000 : f32
    %16 = vector.broadcast %cst_5 : f32 to vector<1x256xf32>
    %17 = vector.broadcast %cst_6 : f32 to vector<1x256xf32>
    %18 = arith.select %15, %16, %17 : vector<1x256xi1>, vector<1x256xf32>
    %c240_i32 = arith.constant 240 : i32
    %19 = vector.broadcast %c240_i32 : i32 to vector<1x256xi32>
    %20 = arith.cmpi sge, %1, %19 : vector<1x256xi32>
    %cst_7 = arith.constant 0xFF800000 : f32
    %cst_8 = arith.constant 0x7F800000 : f32
    %21 = vector.broadcast %cst_7 : f32 to vector<1x256xf32>
    %22 = vector.broadcast %cst_8 : f32 to vector<1x256xf32>
    %23 = arith.select %20, %21, %22 : vector<1x256xi1>, vector<1x256xf32>
    %c1_i32 = arith.constant 1 : i32
    %24 = tpu.dynamic_rotate %0 by %c1_i32 dim 1 : vector<8x256xf32>, i32 -> vector<8x256xf32>
    %25 = vector.broadcast %8 : vector<1x256xf32> to vector<8x256xf32>
    %26 = arith.minimumf %24, %25 : vector<8x256xf32>
    %27 = arith.maximumf %26, %0 : vector<8x256xf32>
    %c255_i32 = arith.constant 255 : i32
    %28 = tpu.dynamic_rotate %0 by %c255_i32 dim 1 : vector<8x256xf32>, i32 -> vector<8x256xf32>
    %29 = vector.broadcast %13 : vector<1x256xf32> to vector<8x256xf32>
    %30 = arith.minimumf %28, %29 : vector<8x256xf32>
    %31 = arith.maximumf %27, %30 : vector<8x256xf32>
    %c16_i32_9 = arith.constant 16 : i32
    %32 = tpu.dynamic_rotate %31 by %c16_i32_9 dim 1 : vector<8x256xf32>, i32 -> vector<8x256xf32>
    %33 = vector.broadcast %18 : vector<1x256xf32> to vector<8x256xf32>
    %34 = arith.minimumf %32, %33 : vector<8x256xf32>
    %35 = arith.maximumf %34, %31 : vector<8x256xf32>
    %c240_i32_10 = arith.constant 240 : i32
    %36 = tpu.dynamic_rotate %31 by %c240_i32_10 dim 1 : vector<8x256xf32>, i32 -> vector<8x256xf32>
    %37 = vector.broadcast %23 : vector<1x256xf32> to vector<8x256xf32>
    %38 = arith.minimumf %36, %37 : vector<8x256xf32>
    %39 = arith.maximumf %35, %38 : vector<8x256xf32>
    %c0_11 = arith.constant 0 : index
    %c0_12 = arith.constant 0 : index
    %40 = vector.load %arg2[%c0_11, %c0_12] : memref<8x256xf32, #tpu.memory_space<vmem>>, vector<8x256xf32>
    tpu.vector_store %arg2[%c0_11, %c0_12], %39 {strides = array<i32>} : memref<8x256xf32, #tpu.memory_space<vmem>>, vector<8x256xf32>,
    return
  }
  func.func @transform_0(%arg0: i32) -> (i32, i32) {
    %c0_i32 = arith.constant 0 : i32
    %c0_i32_0 = arith.constant 0 : i32
    return %arg0, %c0_i32 : i32, i32
  }
  func.func @transform_1(%arg0: i32) -> (i32, i32) {
    %c0_i32 = arith.constant 0 : i32
    %c0_i32_0 = arith.constant 0 : i32
    return %arg0, %c0_i32 : i32, i32
  }
}

</mosaic_0001>

<bundles_post_ra>
// kernel: tpu_custom_call.1
= control target key start
LH: loop header
LB: loop body
LE: loop exit
PB: predicated region body
PF: predicated region fallthrough
CT: control target
= control target key end

     0   :  { %6 = vsyncpa [#allocation3], 0  ;;  %s178_s0 = inlined_call_operand.hbm [shape: f32[8,256], index: 0, kind: input, shape index: {}]   ;;  %s179_s1 = inlined_call_operand.hbm [shape: f32[8,256], index: 1, kind: output, shape index: {}]  }
   0x1   :  { %7 = vsyncpa [#allocation4], 0  ;;  %s155_s6 = smov [#allocation2]  }
   0x2   :  { %s14_s7 = sshll.u32 %s155_s6, 4  ;;  %s15_s7 = int_to_ptr.vmem [resolvable:$true] %s14_s7 }
   0x3   :  { %s119_s8 = scalar_lea.vmem %s15_s7, 256  ;;  %p124_p1 = scmp.lt.s32.totalorder %s15_s7, %s15_s7 }
   0x4   :  { %p120_p0 = scmp.ne.s32.totalorder %s15_s7, %s119_s8  ;;  %p125_p2 = scmp.lt.s32.totalorder %s119_s8, %s119_s8 }
   0x6   :  { %p126_p3 = por %p125_p2, %p124_p1 }
   0x8   :  { %p127_p4 = pnand %p126_p3, %p120_p0 }
   0xa   :  { %130 = shalt.err (!%p127_p4)
}
   0xb   :  { %17 = dma.hbm_to_vmem [thread:$0]  %s178_s0, 256, %s15_s7, [#allocation3]  }
   0xc   :  { %151 = dma.done.wait [#allocation3], 256  }
   0xd   :  { %152 = vsyncadd [#allocation3], 4294967040  ;;  %v21_v0 = vld [vmem:[#allocation2] sm:$0xff]  ;;  %s156_s11 = smov 127   ;;  %s157_s12 = smov 1   ;;  %v22_v1 = vld [vmem:[#allocation2 + $0x8] sm:$0xff]  ;;  %v23_v2 = vlaneseq }
   0xe   :  { %55 = vrot.lane.b32.xlu1 %v21_v0, %s156_s11  ;;  %44 = vrot.lane.b32.xlu0 %v21_v0, %s157_s12  ;;  %v158_v9 = vmov inf   ;;  %s159_s0 = smov 16   ;;  %s160_s13 = smov 112  }
   0xf   :  { %v24_v3 = vand.u32 127, %v23_v2  ;;  %s161_s14 = smov [#allocation5]  }
  0x10   :  { %s95_s15 = sshll.u32 %s161_s14, 4  ;;  %s96_s15 = int_to_ptr.vmem [resolvable:$true] %s95_s15 }
  0x11   :  { %v25_v4 = vadd.s32 128, %v24_v3  ;;  %v26_v5 = vand.u32 15, %v24_v3  ;;  %vm59_vm4 = vcmp.lt.s32.totalorder %v24_v3, 127  ;;  %vm48_vm5 = vcmp.lt.s32.totalorder %v24_v3, 1  ;;  %s131_s16 = scalar_lea.vmem %s96_s15, 256  ;;  %p136_p6 = scmp.lt.s32.totalorder %s96_s15, %s96_s15 }
  0x12   :  { %57 = vrot.lane.b32.xlu1 %v22_v1, %s156_s11  ;;  %46 = vrot.lane.b32.xlu0 %v22_v1, %s157_s12  ;;  %vm36_vm6 = vcmp.lt.s32.totalorder %v24_v3, 16  ;;  %vm80_vm8 = vcmp.lt.s32.totalorder %v24_v3, 112  ;;  %p132_p5 = scmp.ne.s32.totalorder %s96_s15, %s131_s16  ;;  %p137_p7 = scmp.lt.s32.totalorder %s131_s16, %s131_s16 }
  0x13   :  { %v27_v6 = vand.u32 15, %v25_v4  ;;  %vm28_vm0 = vcmp.eq.s32.totalorder %v26_v5, 0  ;;  %vm32_vm2 = vcmp.eq.s32.totalorder %v26_v5, 15  ;;  %v38_v28 = vsel %vm36_vm6, -inf, %v158_v9 }
  0x14   :  { %v30_v10 = vsel %vm28_vm0, -inf, %v158_v9  ;;  %v34_v12 = vsel %vm32_vm2, -inf, %v158_v9  ;;  %vm41_vm7 = vcmp.ge.s32.totalorder %v25_v4, 240  ;;  %p138_p8 = por %p137_p7, %p136_p6 }
  0x15   :  { %vm29_vm1 = vcmp.eq.s32.totalorder %v27_v6, 0  ;;  %vm33_vm3 = vcmp.eq.s32.totalorder %v27_v6, 15  ;;  %v43_v34 = vsel %vm41_vm7, -inf, %v158_v9 }
  0x16   :  { %v31_v11 = vsel %vm29_vm1, -inf, %v158_v9  ;;  %v35_v13 = vsel %vm33_vm3, -inf, %v158_v9  ;;  %p139_p9 = pnand %p138_p8, %p132_p5 }
  0x80   :  { %v56_v7 = vpop.permute.xlu1 %55  ;;  %v45_v8 = vpop.permute.xlu0 %44 }
  0x84   :  { %v58_v14 = vpop.permute.xlu1 %57  ;;  %v47_v15 = vpop.permute.xlu0 %46 }
  0x85   :  { %v60_v16 = vsel %vm59_vm4, %v56_v7, %v58_v14  ;;  %v61_v17 = vsel %vm59_vm4, %v58_v14, %v56_v7  ;;  %v49_v18 = vsel %vm48_vm5, %v45_v8, %v47_v15  ;;  %v50_v19 = vsel %vm48_vm5, %v47_v15, %v45_v8 }
  0x86   :  { %v51_v20 = vmin.f32 %v50_v19, %v30_v10  ;;  %v52_v21 = vmin.f32 %v49_v18, %v31_v11  ;;  %v62_v22 = vmin.f32 %v60_v16, %v34_v12  ;;  %v63_v23 = vmin.f32 %v61_v17, %v35_v13 }
  0x88   :  { %v53_v24 = vmax.f32 %v51_v20, %v21_v0  ;;  %v54_v25 = vmax.f32 %v52_v21, %v22_v1 }
  0x8a   :  { %v64_v26 = vmax.f32 %v53_v24, %v62_v22  ;;  %v65_v27 = vmax.f32 %v54_v25, %v63_v23 }
  0x8c   :  { %66 = vrot.lane.b32.xlu0 %v64_v26, %s159_s0  ;;  %68 = vrot.lane.b32.xlu1 %v65_v27, %s159_s0 }
  0x90   :  { %76 = vrot.lane.b32.xlu0 %v64_v26, %s160_s13  ;;  %78 = vrot.lane.b32.xlu1 %v65_v27, %s160_s13 }
  0xfe   :  { %v67_v29 = vpop.permute.xlu0 %66  ;;  %v69_v30 = vpop.permute.xlu1 %68 }
  0xff   :  { %v71_v31 = vsel %vm36_vm6, %v69_v30, %v67_v29  ;;  %v70_v33 = vsel %vm36_vm6, %v67_v29, %v69_v30 }
 0x100   :  { %v72_v32 = vmin.f32 %v71_v31, %v38_v28  ;;  %v75_v40 = vmax.f32 %v70_v33, %v65_v27 }
 0x102   :  { %v77_v35 = vpop.permute.xlu0 %76  ;;  %v74_v36 = vmax.f32 %v72_v32, %v64_v26  ;;  %v79_v37 = vpop.permute.xlu1 %78 }
 0x103   :  { %v81_v38 = vsel %vm80_vm8, %v77_v35, %v79_v37  ;;  %v82_v39 = vsel %vm80_vm8, %v79_v37, %v77_v35 }
 0x104   :  { %v84_v41 = vmin.f32 %v82_v39, %v43_v34  ;;  %v85_v42 = vmax.f32 %v74_v36, %v81_v38 }
 0x106   :  { %v86_v43 = vmax.f32 %v75_v40, %v84_v41  ;;  %87 = vst [vmem:[#allocation5] sm:$0xff] %v85_v42 }
 0x108   :  { %88 = vst [vmem:[#allocation5 + $0x8] sm:$0xff] %v86_v43 }
 0x109   :  { %142 = shalt.err (!%p139_p9)
}
 0x10a   :  { %98 = dma.vmem_to_hbm [thread:$0]  %s96_s15, 256, %s179_s1, [#allocation4]  }
 0x10b   :  { %153 = dma.done.wait [#allocation4], 256  }
 0x10c   :  { %154 = vsyncadd [#allocation4], 4294967040 }
 0x10d   :  { %102 = vsyncpa [#allocation3], 1 }
 0x10e   :  { %103 = vsyncpa [#allocation4], 1 }

</bundles_post_ra>
